<compile_context>
chip_gen: v5e
topology: v5e:2x2
jax: 0.10.0
libtpu: 0.0.40
codegen_flags: <defaults>
</compile_context>

<pallas_src>
import functools

import numpy as np
import jax
import jax.numpy as jnp
from jax.experimental import pallas as pl
from jax.experimental.pallas import tpu as pltpu

N_BINS_PER_OCTAVE = 12  # constant used by the PyTorch module (defined externally there)


def _harmonic_stack_kernel(x_ref, o_ref, *, shifts):
    # x_ref: (1, n_bins, TF)     VMEM tile (one batch element, one frame tile)
    # o_ref: (1, H, n_bins, TF)  VMEM tile
    n_bins = x_ref.shape[1]
    tf = x_ref.shape[2]
    dtype = x_ref.dtype
    for i, s in enumerate(shifts):  # shifts are static Python ints -> fully unrolled
        if s == 0:
            o_ref[0, i, :, :] = x_ref[0, :, :]
        elif s > 0:
            # out[i, :n_bins-s, :] = x[s:, :]; zero-pad the high-bin end.
            o_ref[0, i, 0:n_bins - s, :] = x_ref[0, s:n_bins, :]
            o_ref[0, i, n_bins - s:n_bins, :] = jnp.zeros((s, tf), dtype)
        else:
            # out[i, -s:, :] = x[:s, :]; zero-pad the low-bin end.
            p = -s
            o_ref[0, i, 0:p, :] = jnp.zeros((p, tf), dtype)
            o_ref[0, i, p:n_bins, :] = x_ref[0, 0:n_bins - p, :]


def _pick_frame_tile(n_frames, n_bins, n_harm, itemsize,
                     max_frames_per_block, vmem_budget_bytes):
    """Largest frame tile that is a multiple of 128, divides n_frames, and keeps
    the double-buffered (input + H-wide output) footprint under budget."""
    if n_frames % 128 != 0 or n_frames <= 128:
        # Fall back to a full-extent frame block (always legal). Pad n_frames to
        # a multiple of 128 upstream for lane-dense, unmasked stores.
        return n_frames
    per_frame_bytes = 2 * (1 + n_harm) * n_bins * itemsize  # double-buffered column
    cap = min(max_frames_per_block,
              max(128, (vmem_budget_bytes // per_frame_bytes) // 128 * 128))
    tf = 128
    cand = 128
    while cand <= min(n_frames, cap):
        if n_frames % cand == 0:
            tf = cand
        cand += 128
    return tf


def harmonic_stacking(x, harmonics, *,
                      max_frames_per_block=2048,
                      vmem_budget_bytes=24 << 20):
    """Pallas equivalent of HarmonicStacking.forward."""
    shifts = tuple(
        int(np.round(N_BINS_PER_OCTAVE * np.log2(h))) for h in harmonics)
    B, n_bins, n_frames = x.shape
    H = len(harmonics)
    assert all(abs(s) < n_bins for s in shifts), "shift exceeds n_bins"

    tf = _pick_frame_tile(n_frames, n_bins, H, x.dtype.itemsize,
                          max_frames_per_block, vmem_budget_bytes)
    grid = (B, n_frames // tf)

    kernel = functools.partial(_harmonic_stack_kernel, shifts=shifts)

    return pl.pallas_call(
        kernel,
        out_shape=jax.ShapeDtypeStruct((B, H, n_bins, n_frames), x.dtype),
        grid=grid,
        in_specs=[pl.BlockSpec((1, n_bins, tf), lambda b, f: (b, 0, f))],
        out_specs=pl.BlockSpec((1, H, n_bins, tf), lambda b, f: (b, 0, 0, f)),
        compiler_params=pltpu.CompilerParams(
            dimension_semantics=("parallel", "parallel"),
            vmem_limit_bytes=48 << 20),
    )(x)


def _reference_numpy(x, harmonics):
    """Direct transcription of the PyTorch forward for verification."""
    shifts = [int(np.round(N_BINS_PER_OCTAVE * np.log2(h))) for h in harmonics]
    n_batch, n_bins, n_frames = x.shape
    shifted = np.zeros((n_batch, len(harmonics), n_bins, n_frames),
                       dtype=x.dtype)
    for i, s in enumerate(shifts):
        if s == 0:
            shifted[:, i] = x
        elif s > 0:
            shifted[:, i, :-s, :] = x[:, s:, :]
        else:
            shifted[:, i, -s:, :] = x[:, :s, :]
    return shifted


if __name__ == "__main__":
    # HarmonicStacking has no learnable parameters; only the harmonics list.
    harmonics = [0.5, 1.0, 2.0, 3.0, 4.0]   # shifts: [-12, 0, 12, 19, 24]

    key = jax.random.PRNGKey(0)
    configs = [
        # (B, n_bins, n_frames, kwargs)
        (2, 48, 256, {}),                                  # aligned, single frame tile
        (2, 48, 512, dict(max_frames_per_block=128)),      # 4 frame tiles (pipelined path)
        (1, 48, 100, {}),                                  # non-128 n_frames fallback
    ]
    for B, n_bins, n_frames, kwargs in configs:
        key, sub = jax.random.split(key)
        x = jax.random.normal(sub, (B, n_bins, n_frames), dtype=jnp.float32)
        out = jax.block_until_ready(harmonic_stacking(x, harmonics, **kwargs))
        ref = _reference_numpy(np.asarray(x), harmonics)
        np.testing.assert_allclose(np.asarray(out), ref, rtol=0, atol=0)

    print("KERNEL_OK")
</pallas_src>

<mosaic_0001>
module attributes {stable_mosaic.version = 11 : i64} {
  func.func @_harmonic_stack_kernel(%arg0: i32, %arg1: i32, %arg2: memref<1x48x256xf32, #tpu.memory_space<vmem>>, %arg3: memref<1x5x48x256xf32, #tpu.memory_space<vmem>>) attributes {dimension_semantics = [#tpu.dimension_semantics<parallel>, #tpu.dimension_semantics<parallel>], iteration_bounds = array<i64: 2, 1>, scalar_prefetch = 0 : i64, scratch_operands = 0 : i64, tpu.core_type = #tpu.core_type<tc>, window_params = [{transform_indices = @transform_0, window_bounds = array<i64: 1, 48, 256>}, {transform_indices = @transform_1, window_bounds = array<i64: 1, 5, 48, 256>}]} {
    %cst = arith.constant 0.000000e+00 : f32
    %0 = vector.broadcast %cst : f32 to vector<12x256xf32>
    %c0 = arith.constant 0 : index
    %c0_0 = arith.constant 0 : index
    %c0_1 = arith.constant 0 : index
    %c0_2 = arith.constant 0 : index
    %1 = vector.load %arg3[%c0, %c0_0, %c0_1, %c0_2] : memref<1x5x48x256xf32, #tpu.memory_space<vmem>>, vector<1x1x12x256xf32>
    %2 = vector.shape_cast %1 : vector<1x1x12x256xf32> to vector<12x256xf32>
    %3 = vector.shape_cast %0 : vector<12x256xf32> to vector<1x1x12x256xf32>
    tpu.vector_store %arg3[%c0, %c0_0, %c0_1, %c0_2], %3 {strides = array<i32>} : memref<1x5x48x256xf32, #tpu.memory_space<vmem>>, vector<1x1x12x256xf32>,
    %c0_3 = arith.constant 0 : index
    %c0_4 = arith.constant 0 : index
    %c0_5 = arith.constant 0 : index
    %4 = vector.load %arg2[%c0_3, %c0_4, %c0_5] : memref<1x48x256xf32, #tpu.memory_space<vmem>>, vector<1x36x256xf32>
    %5 = vector.shape_cast %4 : vector<1x36x256xf32> to vector<36x256xf32>
    %c0_6 = arith.constant 0 : index
    %c0_7 = arith.constant 0 : index
    %c12 = arith.constant 12 : index
    %c0_8 = arith.constant 0 : index
    %6 = vector.load %arg3[%c0_6, %c0_7, %c12, %c0_8] : memref<1x5x48x256xf32, #tpu.memory_space<vmem>>, vector<1x1x36x256xf32>
    %7 = vector.shape_cast %6 : vector<1x1x36x256xf32> to vector<36x256xf32>
    %8 = vector.shape_cast %5 : vector<36x256xf32> to vector<1x1x36x256xf32>
    tpu.vector_store %arg3[%c0_6, %c0_7, %c12, %c0_8], %8 {strides = array<i32>} : memref<1x5x48x256xf32, #tpu.memory_space<vmem>>, vector<1x1x36x256xf32>,
    %c0_9 = arith.constant 0 : index
    %c0_10 = arith.constant 0 : index
    %c0_11 = arith.constant 0 : index
    %9 = vector.load %arg2[%c0_9, %c0_10, %c0_11] : memref<1x48x256xf32, #tpu.memory_space<vmem>>, vector<1x48x256xf32>
    %10 = vector.shape_cast %9 : vector<1x48x256xf32> to vector<48x256xf32>
    %c0_12 = arith.constant 0 : index
    %c1 = arith.constant 1 : index
    %c0_13 = arith.constant 0 : index
    %c0_14 = arith.constant 0 : index
    %11 = vector.load %arg3[%c0_12, %c1, %c0_13, %c0_14] : memref<1x5x48x256xf32, #tpu.memory_space<vmem>>, vector<1x1x48x256xf32>
    %12 = vector.shape_cast %11 : vector<1x1x48x256xf32> to vector<48x256xf32>
    %13 = vector.shape_cast %10 : vector<48x256xf32> to vector<1x1x48x256xf32>
    tpu.vector_store %arg3[%c0_12, %c1, %c0_13, %c0_14], %13 {strides = array<i32>} : memref<1x5x48x256xf32, #tpu.memory_space<vmem>>, vector<1x1x48x256xf32>,
    %c0_15 = arith.constant 0 : index
    %c12_16 = arith.constant 12 : index
    %c0_17 = arith.constant 0 : index
    %14 = vector.load %arg2[%c0_15, %c12_16, %c0_17] : memref<1x48x256xf32, #tpu.memory_space<vmem>>, vector<1x36x256xf32>
    %15 = vector.shape_cast %14 : vector<1x36x256xf32> to vector<36x256xf32>
    %c0_18 = arith.constant 0 : index
    %c2 = arith.constant 2 : index
    %c0_19 = arith.constant 0 : index
    %c0_20 = arith.constant 0 : index
    %16 = vector.load %arg3[%c0_18, %c2, %c0_19, %c0_20] : memref<1x5x48x256xf32, #tpu.memory_space<vmem>>, vector<1x1x36x256xf32>
    %17 = vector.shape_cast %16 : vector<1x1x36x256xf32> to vector<36x256xf32>
    %18 = vector.shape_cast %15 : vector<36x256xf32> to vector<1x1x36x256xf32>
    tpu.vector_store %arg3[%c0_18, %c2, %c0_19, %c0_20], %18 {strides = array<i32>} : memref<1x5x48x256xf32, #tpu.memory_space<vmem>>, vector<1x1x36x256xf32>,
    %cst_21 = arith.constant 0.000000e+00 : f32
    %19 = vector.broadcast %cst_21 : f32 to vector<12x256xf32>
    %c0_22 = arith.constant 0 : index
    %c2_23 = arith.constant 2 : index
    %c36 = arith.constant 36 : index
    %c0_24 = arith.constant 0 : index
    %20 = vector.load %arg3[%c0_22, %c2_23, %c36, %c0_24] : memref<1x5x48x256xf32, #tpu.memory_space<vmem>>, vector<1x1x12x256xf32>
    %21 = vector.shape_cast %20 : vector<1x1x12x256xf32> to vector<12x256xf32>
    %22 = vector.shape_cast %19 : vector<12x256xf32> to vector<1x1x12x256xf32>
    tpu.vector_store %arg3[%c0_22, %c2_23, %c36, %c0_24], %22 {strides = array<i32>} : memref<1x5x48x256xf32, #tpu.memory_space<vmem>>, vector<1x1x12x256xf32>,
    %c0_25 = arith.constant 0 : index
    %c19 = arith.constant 19 : index
    %c0_26 = arith.constant 0 : index
    %23 = vector.load %arg2[%c0_25, %c19, %c0_26] : memref<1x48x256xf32, #tpu.memory_space<vmem>>, vector<1x29x256xf32>
    %24 = vector.shape_cast %23 : vector<1x29x256xf32> to vector<29x256xf32>
    %c0_27 = arith.constant 0 : index
    %c3 = arith.constant 3 : index
    %c0_28 = arith.constant 0 : index
    %c0_29 = arith.constant 0 : index
    %25 = vector.load %arg3[%c0_27, %c3, %c0_28, %c0_29] : memref<1x5x48x256xf32, #tpu.memory_space<vmem>>, vector<1x1x29x256xf32>
    %26 = vector.shape_cast %25 : vector<1x1x29x256xf32> to vector<29x256xf32>
    %27 = vector.shape_cast %24 : vector<29x256xf32> to vector<1x1x29x256xf32>
    tpu.vector_store %arg3[%c0_27, %c3, %c0_28, %c0_29], %27 {strides = array<i32>} : memref<1x5x48x256xf32, #tpu.memory_space<vmem>>, vector<1x1x29x256xf32>,
    %cst_30 = arith.constant 0.000000e+00 : f32
    %28 = vector.broadcast %cst_30 : f32 to vector<19x256xf32>
    %c0_31 = arith.constant 0 : index
    %c3_32 = arith.constant 3 : index
    %c29 = arith.constant 29 : index
    %c0_33 = arith.constant 0 : index
    %29 = vector.load %arg3[%c0_31, %c3_32, %c29, %c0_33] : memref<1x5x48x256xf32, #tpu.memory_space<vmem>>, vector<1x1x19x256xf32>
    %30 = vector.shape_cast %29 : vector<1x1x19x256xf32> to vector<19x256xf32>
    %31 = vector.shape_cast %28 : vector<19x256xf32> to vector<1x1x19x256xf32>
    tpu.vector_store %arg3[%c0_31, %c3_32, %c29, %c0_33], %31 {strides = array<i32>} : memref<1x5x48x256xf32, #tpu.memory_space<vmem>>, vector<1x1x19x256xf32>,
    %c0_34 = arith.constant 0 : index
    %c24 = arith.constant 24 : index
    %c0_35 = arith.constant 0 : index
    %32 = vector.load %arg2[%c0_34, %c24, %c0_35] : memref<1x48x256xf32, #tpu.memory_space<vmem>>, vector<1x24x256xf32>
    %33 = vector.shape_cast %32 : vector<1x24x256xf32> to vector<24x256xf32>
    %c0_36 = arith.constant 0 : index
    %c4 = arith.constant 4 : index
    %c0_37 = arith.constant 0 : index
    %c0_38 = arith.constant 0 : index
    %34 = vector.load %arg3[%c0_36, %c4, %c0_37, %c0_38] : memref<1x5x48x256xf32, #tpu.memory_space<vmem>>, vector<1x1x24x256xf32>
    %35 = vector.shape_cast %34 : vector<1x1x24x256xf32> to vector<24x256xf32>
    %36 = vector.shape_cast %33 : vector<24x256xf32> to vector<1x1x24x256xf32>
    tpu.vector_store %arg3[%c0_36, %c4, %c0_37, %c0_38], %36 {strides = array<i32>} : memref<1x5x48x256xf32, #tpu.memory_space<vmem>>, vector<1x1x24x256xf32>,
    %cst_39 = arith.constant 0.000000e+00 : f32
    %37 = vector.broadcast %cst_39 : f32 to vector<24x256xf32>
    %c0_40 = arith.constant 0 : index
    %c4_41 = arith.constant 4 : index
    %c24_42 = arith.constant 24 : index
    %c0_43 = arith.constant 0 : index
    %38 = vector.load %arg3[%c0_40, %c4_41, %c24_42, %c0_43] : memref<1x5x48x256xf32, #tpu.memory_space<vmem>>, vector<1x1x24x256xf32>
    %39 = vector.shape_cast %38 : vector<1x1x24x256xf32> to vector<24x256xf32>
    %40 = vector.shape_cast %37 : vector<24x256xf32> to vector<1x1x24x256xf32>
    tpu.vector_store %arg3[%c0_40, %c4_41, %c24_42, %c0_43], %40 {strides = array<i32>} : memref<1x5x48x256xf32, #tpu.memory_space<vmem>>, vector<1x1x24x256xf32>,
    return
  }
  func.func @transform_0(%arg0: i32, %arg1: i32) -> (i32, i32, i32) {
    %c0_i32 = arith.constant 0 : i32
    %c0_i32_0 = arith.constant 0 : i32
    return %arg0, %c0_i32, %arg1 : i32, i32, i32
  }
  func.func @transform_1(%arg0: i32, %arg1: i32) -> (i32, i32, i32, i32) {
    %c0_i32 = arith.constant 0 : i32
    %c0_i32_0 = arith.constant 0 : i32
    %c0_i32_1 = arith.constant 0 : i32
    return %arg0, %c0_i32, %c0_i32_0, %arg1 : i32, i32, i32, i32
  }
}

</mosaic_0001>

<bundles_post_ra>
// kernel: tpu_custom_call.1
= control target key start
LH: loop header
LB: loop body
LE: loop exit
PB: predicated region body
PF: predicated region fallthrough
CT: control target
= control target key end

     0   :  { %6 = vsyncpa [#allocation3], 0  ;;  %s990_s0 = inlined_call_operand.hbm [shape: f32[2,48,256], index: 0, kind: input, shape index: {}]   ;;  %s991_s1 = inlined_call_operand.hbm [shape: f32[2,5,48,256], index: 1, kind: output, shape index: {}]  }
   0x1   :  { %8 = vsyncpa [#allocation3 + $0x1], 0 }
   0x2   :  { %9 = vsyncpa [#allocation4], 0 }
   0x3   :  { %11 = vsyncpa [#allocation4 + $0x1], 0  ;;  %s748_s6 = smov 0   ;;  %s750_s7 = smov 0  }
   0x4   :  { %s752_s8 = smov 0   ;;  %s754_s9 = smov 0  }
   0x5   :  { %s756_s10 = smov 0   ;;  %s758_s11 = smov 0  }
   0x6 LB: > { %s486_s12 = sadd.s32 4294967295, %s731_s11   ;;  %s487_s13 = sadd.s32 4294967294, %s731_s11   ;;  %s731_s11 = sphi %s758_s11, %s17_s11   ;;  %s727_s10 = sphi %s756_s10, %s1000_s10   ;;  %s723_s9 = sphi %s754_s9, %s999_s9   ;;  %s719_s8 = sphi %s752_s8, %s998_s8   ;;  %s715_s7 = sphi %s750_s7, %s997_s7   ;;  %s711_s6 = sphi %s748_s6, %s996_s6  }
   0x7   : > { %s29_s14 = sadd.s32 1, %s727_s10  ;;  %s38_s15 = sadd.s32 1, %s719_s8 }
   0x8   : > { %p31_p0 = scmp.ge.s32.totalorder %s29_s14, 2  ;;  %p45_p1 = scmp.ne.s32.totalorder %s719_s8, %s715_s7 }
   0x9   : > { %p46_p2 = scmp.eq.s32.totalorder %s731_s11, 0  ;;  %p51_p3 = scmp.ne.s32.totalorder %s715_s7, %s711_s6 }
   0xa   : > { %s1002_s14 = smov (%p31_p0, %s29_s14), 0  ;;  %p52_p5 = scmp.eq.s32.totalorder %s486_s12, 0 }
   0xb   : > { %p789_p4 = por %p46_p2, %p45_p1  ;;  %s33_s17 = ssub.s32 %s727_s10, %s1002_s14 }
   0xc   : > { %p77_p6 = scmp.eq.s32.totalorder %s486_s12, 1  ;;  %p36_p7 = scmp.eq.s32.totalorder %s33_s17, 0 }
   0xd   : > { %p795_p8 = por %p52_p5, %p51_p3  ;;  %p83_p10 = scmp.eq.s32.totalorder %s487_s13, 1 }
   0xe   : > { %p799_p9 = por %p77_p6, %p45_p1  ;;  %p489_p12 = scmp.ge.s32.totalorder %s731_s11, 2 }
   0xf   : > { %s804_s20 = scalar_select %p36_p7, %s719_s8, %s38_s15  }
  0x10   : > { %p806_p11 = por %p83_p10, %p51_p3  ;;  %p564_p13 = scmp.lt.s32.totalorder %s731_s11, 2 }
  0x11   : > { %s103_s22 = sand.u32 1, %s719_s8   ;;  %s548_s24 = smul.u32 96, %s727_s10 }
  0x12   : > { %s547_s23 = smul.u32 96, %s103_s22  ;;  %p557_p0 = pnand %p564_p13, %p789_p4 }
  0x13   : > { %s114_s27 = scalar_lea.hbm %s990_s0, %s548_s24  ;;  %p491_p1 = scmp.ge.s32.totalorder %s731_s11, 1 }
  0x14   : > { %s107_s28 = scalar_lea.vmem [#allocation2], %s547_s23  ;;  %s115_s30 = sshll.u32 %s114_s27, 4  ;;  %s116_s30 = int_to_ptr.hbm [resolvable:$true] %s115_s30 }
  0x15   : > { %s117_s29 = sshll.u32 %s107_s28, 4  ;;  %s104_s2 = scalar_lea.sflag [#allocation3], %s103_s22  ;;  %s118_s29 = int_to_ptr.vmem [resolvable:$true] %s117_s29 }
  0x16   : > { %s733_s3 = smov 256   ;;  %s734_s4 = smov 16  }
  0x17   : > { %559 = dma.hbm_to_vmem [thread:$0]  (!%p557_p0), %s116_s30, 1536, %s118_s29, %s104_s2, %s733_s3, %s733_s3, %s734_s4  }
  0x18   : > { %p125_p2 = scmp.lt.s32.totalorder %s731_s11, 3 }
  0x1a   : > { %p126_p3 = pnand %p491_p1, %p125_p2 }
  0x1b   : > { %s822_s5 = sand.u32 (!%p126_p3), 1, %s715_s7  }
  0x1c   : > { %129 = sbr.rel (%p126_p3) target bundleno = 106 (0x6a), region = 24  ;;  %s132_s13 = scalar_lea.sflag (!%p126_p3), [#allocation3], %s822_s5 }
  0x1d   : > { %s549_s12 = smul.u32 (!%p126_p3), 96, %s822_s5 }
  0x1f   : > { %s826_s15 = scalar_lea.vmem (!%p126_p3), [#allocation2], %s549_s12 }
  0x21   : > { %702 = dma.done.wait (%p795_p8), %s132_s13, 1536  }
  0x22   : > { %704 = vsyncadd (%p795_p8), %s132_s13, 4294965760  ;;  %s550_s16 = smul.u32 480, %s822_s5  ;;  %v735_v0 = vmov 0.0   ;;  %v161_v1 = vld [vmem:[%s826_s15] sm:$0xff]  ;;  %v163_v2 = vld [vmem:[%s826_s15 + $0x10] sm:$0xff]  ;;  %vm181_vm0 = vcmask 1043456  }
  0x23   : > { %v162_v3 = vld [vmem:[%s826_s15 + $0x8] sm:$0xff]  ;;  %v164_v4 = vld [vmem:[%s826_s15 + $0x18] sm:$0xff]  ;;  %v165_v5 = vld [vmem:[%s826_s15 + $0x20] sm:$0xff]  ;;  %v182_v6 = vrot.slane %v161_v1, 4  ;;  %v184_v7 = vrot.slane %v163_v2, 4  ;;  %vm324_vm1 = vcmask 1044480  }
  0x24   : > { %s833_s17 = scalar_lea.vmem [#allocation5], %s550_s16  ;;  %v166_v8 = vld [vmem:[%s826_s15 + $0x28] sm:$0xff]  ;;  %v183_v9 = vrot.slane %v162_v3, 4  ;;  %v186_v10 = vrot.slane %v164_v4, 4  ;;  %v859_v11 = vld [vmem:[%s826_s15 + $0x30] sm:$0xff]  ;;  %v188_v12 = vrot.slane %v165_v5, 4 }
  0x25   : > { %157 = vst [vmem:[%s833_s17] sm:$0xff] %v735_v0  ;;  %v863_v13 = vld [vmem:[%s826_s15 + $0x38] sm:$0xff]  ;;  %v190_v14 = vrot.slane %v166_v8, 4  ;;  %v169_v15 = vld [vmem:[%s826_s15 + $0x40] sm:$0xf]  ;;  %v185_v16 = vsel %vm181_vm0, %v182_v6, %v184_v7  ;;  %v192_v17 = vrot.slane %v859_v11, 4  ;;  %v229_v34 = vld [vmem:[%s826_s15 + $0x48] sm:$0xff] }
  0x26   : > { %158 = vst [vmem:[%s833_s17 + $0x8] sm:$0xff] %v735_v0  ;;  %v170_v18 = vld [vmem:[%s826_s15 + $0x48] sm:$0xf]  ;;  %v187_v19 = vsel %vm181_vm0, %v183_v9, %v186_v10  ;;  %v194_v20 = vrot.slane %v863_v13, 4  ;;  %v189_v21 = vsel %vm181_vm0, %v184_v7, %v188_v12  ;;  %v196_v22 = vrot.slane %v169_v15, 4  ;;  %v228_v32 = vld [vmem:[%s826_s15 + $0x40] sm:$0xff] }
  0x27   : > { %159 = vst [vmem:[%s833_s17 + $0x10] sm:$0xf] %v735_v0  ;;  %v191_v23 = vsel %vm181_vm0, %v186_v10, %v190_v14  ;;  %v198_v24 = vrot.slane %v170_v18, 4  ;;  %v193_v25 = vsel %vm181_vm0, %v188_v12, %v192_v17  ;;  %v245_v29 = vld [vmem:[%s826_s15 + $0x10] sm:$0xf0]  ;;  %v275_v37 = vrot.slane %v228_v32, 4 }
  0x28   : > { %160 = vst [vmem:[%s833_s17 + $0x18] sm:$0xf] %v735_v0  ;;  %v195_v26 = vsel %vm181_vm0, %v190_v14, %v194_v20  ;;  %v197_v27 = vsel %vm181_vm0, %v192_v17, %v196_v22  ;;  %v246_v30 = vld [vmem:[%s826_s15 + $0x18] sm:$0xf0]  ;;  %v265_v31 = vrot.slane %v245_v29, 4  ;;  %v230_v35 = vld [vmem:[%s826_s15 + $0x50] sm:$0xff] }
  0x29   : > { %514 = vst [vmem:[%s833_s17 + $0x100] sm:$0xf0] %v735_v0  ;;  %v199_v28 = vsel %vm181_vm0, %v194_v20, %v198_v24  ;;  %v268_v33 = vrot.slane %v246_v30, 4  ;;  %v231_v38 = vld [vmem:[%s826_s15 + $0x58] sm:$0xff]  ;;  %v277_v40 = vrot.slane %v229_v34, 4  ;;  %v279_v41 = vrot.slane %v230_v35, 4 }
  0x2a   : > { %515 = vst [vmem:[%s833_s17 + $0x108] sm:$0xf0] %v735_v0  ;;  %v267_v36 = vsel %vm181_vm0, %v265_v31, %v188_v12  ;;  %v308_v42 = vld [vmem:[%s826_s15 + $0x20] sm:$0xf8]  ;;  %v276_v43 = vsel %vm181_vm0, %v192_v17, %v275_v37  ;;  %v281_v44 = vrot.slane %v231_v38, 4  ;;  %v326_v49 = vrot.slane %v859_v11, 3 }
  0x2b   : > { %516 = vst [vmem:[%s833_s17 + $0x110] sm:$0xff] %v735_v0  ;;  %v270_v39 = vsel %vm181_vm0, %v268_v33, %v190_v14  ;;  %v309_v45 = vld [vmem:[%s826_s15 + $0x28] sm:$0xf8]  ;;  %v278_v46 = vsel %vm181_vm0, %v194_v20, %v277_v40  ;;  %v280_v47 = vsel %vm181_vm0, %v275_v37, %v279_v41  ;;  %v325_v48 = vrot.slane %v308_v42, 3  ;;  %s551_s18 = smul.u32 480, %s723_s9  ;;  %s396_s25 = sshll.u32 %s833_s17, 4  ;;  %s397_s25 = int_to_ptr.vmem [resolvable:$true] %s396_s25 }
  0x2c   : > { %517 = vst [vmem:[%s833_s17 + $0x118] sm:$0xff] %v735_v0  ;;  %v328_v50 = vrot.slane %v309_v45, 3  ;;  %v329_v51 = vrot.slane %v863_v13, 3  ;;  %v282_v52 = vsel %vm181_vm0, %v277_v40, %v281_v44  ;;  %v331_v53 = vrot.slane %v228_v32, 3  ;;  %s382_s26 = scalar_lea.sflag [#allocation4], %s822_s5  ;;  %s669_s2 = scalar_lea.hbm %s991_s1, 960 }
  0x2d   : > { %526 = vst [vmem:[%s833_s17 + $0x150] sm:$0xe0] %v735_v0  ;;  %v333_v54 = vrot.slane %v229_v34, 3  ;;  %v327_v55 = vsel %vm324_vm1, %v325_v48, %v326_v49  ;;  %v335_v56 = vrot.slane %v230_v35, 3  ;;  %v337_v59 = vrot.slane %v231_v38, 3  ;;  %s395_s24 = scalar_lea.hbm %s991_s1, %s551_s18 }
  0x2e   : > { %527 = vst [vmem:[%s833_s17 + $0x158] sm:$0xe0] %v735_v0  ;;  %v330_v57 = vsel %vm324_vm1, %v328_v50, %v329_v51  ;;  %v332_v58 = vsel %vm324_vm1, %v326_v49, %v331_v53  ;;  %s398_s9 = sshll.u32 %s395_s24, 4  ;;  %s399_s9 = int_to_ptr.hbm [resolvable:$true] %s398_s9 }
  0x2f   : > { %528 = vst [vmem:[%s833_s17 + $0x160] sm:$0xff] %v735_v0  ;;  %v334_v60 = vsel %vm324_vm1, %v329_v51, %v333_v54  ;;  %v336_v61 = vsel %vm324_vm1, %v331_v53, %v335_v56  ;;  %v338_v62 = vsel %vm324_vm1, %v333_v54, %v337_v59  ;;  %s663_s27 = sshra.s32 %s399_s9, 4  ;;  %s664_s27 = int_to_ptr.hbm [resolvable:$true] %s663_s27 }
  0x30   : > { %529 = vst [vmem:[%s833_s17 + $0x168] sm:$0xff] %v735_v0  ;;  %s665_s28 = scalar_lea.hbm %s664_s27, 480  ;;  %p670_p7 = scmp.lt.s32.totalorder %s664_s27, %s991_s1 }
  0x31   : > { %530 = vst [vmem:[%s833_s17 + $0x170] sm:$0xff] %v735_v0  ;;  %p666_p4 = scmp.ne.s32.totalorder %s664_s27, %s665_s28  ;;  %p671_p8 = scmp.lt.s32.totalorder %s669_s2, %s665_s28 }
  0x32   : > { %531 = vst [vmem:[%s833_s17 + $0x178] sm:$0xff] %v735_v0 }
  0x33   : > { %538 = vst [vmem:[%s833_s17 + $0x1b0] sm:$0xff] %v735_v0  ;;  %p667_p5 = pnand %p666_p4, %p799_p9  ;;  %p672_p10 = por %p671_p8, %p670_p7 }
  0x34   : > { %539 = vst [vmem:[%s833_s17 + $0x1b8] sm:$0xff] %v735_v0 }
  0x35   : > { %540 = vst [vmem:[%s833_s17 + $0x1c0] sm:$0xff] %v735_v0  ;;  %p668_p6 = pneg %p667_p5 }
  0x36   : > { %541 = vst [vmem:[%s833_s17 + $0x1c8] sm:$0xff] %v735_v0 }
  0x37   : > { %542 = vst [vmem:[%s833_s17 + $0x1d0] sm:$0xff] %v735_v0  ;;  %p673_p13 = pnand %p672_p10, %p668_p6 }
  0x38   : > { %543 = vst [vmem:[%s833_s17 + $0x1d8] sm:$0xff] %v735_v0 }
  0x39   : > { %210 = vst [vmem:[%s833_s17 + $0x10] sm:$0xf0] %v182_v6 }
  0x3a   : > { %211 = vst [vmem:[%s833_s17 + $0x18] sm:$0xf0] %v183_v9 }
  0x3b   : > { %212 = vst [vmem:[%s833_s17 + $0x20] sm:$0xff] %v185_v16 }
  0x3c   : > { %213 = vst [vmem:[%s833_s17 + $0x28] sm:$0xff] %v187_v19 }
  0x3d   : > { %214 = vst [vmem:[%s833_s17 + $0x30] sm:$0xff] %v189_v21 }
  0x3e   : > { %215 = vst [vmem:[%s833_s17 + $0x38] sm:$0xff] %v191_v23 }
  0x3f   : > { %216 = vst [vmem:[%s833_s17 + $0x40] sm:$0xff] %v193_v25 }
  0x40   : > { %217 = vst [vmem:[%s833_s17 + $0x48] sm:$0xff] %v195_v26 }
  0x41   : > { %218 = vst [vmem:[%s833_s17 + $0x50] sm:$0xff] %v197_v27 }
  0x42   : > { %219 = vst [vmem:[%s833_s17 + $0x58] sm:$0xff] %v199_v28 }
  0x43   : > { %492 = vst [vmem:[%s833_s17 + $0x60] sm:$0xff] %v161_v1 }
  0x44   : > { %493 = vst [vmem:[%s833_s17 + $0x68] sm:$0xff] %v162_v3 }
  0x45   : > { %494 = vst [vmem:[%s833_s17 + $0x70] sm:$0xff] %v163_v2 }
  0x46   : > { %495 = vst [vmem:[%s833_s17 + $0x78] sm:$0xff] %v164_v4 }
  0x47   : > { %496 = vst [vmem:[%s833_s17 + $0x80] sm:$0xff] %v165_v5 }
  0x48   : > { %497 = vst [vmem:[%s833_s17 + $0x88] sm:$0xff] %v166_v8 }
  0x49   : > { %498 = vst [vmem:[%s833_s17 + $0x90] sm:$0xff] %v859_v11 }
  0x4a   : > { %499 = vst [vmem:[%s833_s17 + $0x98] sm:$0xff] %v863_v13 }
  0x4b   : > { %500 = vst [vmem:[%s833_s17 + $0xa0] sm:$0xff] %v228_v32 }
  0x4c   : > { %501 = vst [vmem:[%s833_s17 + $0xa8] sm:$0xff] %v229_v34 }
  0x4d   : > { %502 = vst [vmem:[%s833_s17 + $0xb0] sm:$0xff] %v230_v35 }
  0x4e   : > { %503 = vst [vmem:[%s833_s17 + $0xb8] sm:$0xff] %v231_v38 }
  0x4f   : > { %504 = vst [vmem:[%s833_s17 + $0xc0] sm:$0xff] %v267_v36 }
  0x50   : > { %505 = vst [vmem:[%s833_s17 + $0xc8] sm:$0xff] %v270_v39 }
  0x51   : > { %506 = vst [vmem:[%s833_s17 + $0xd0] sm:$0xff] %v193_v25 }
  0x52   : > { %507 = vst [vmem:[%s833_s17 + $0xd8] sm:$0xff] %v195_v26 }
  0x53   : > { %508 = vst [vmem:[%s833_s17 + $0xe0] sm:$0xff] %v276_v43 }
  0x54   : > { %509 = vst [vmem:[%s833_s17 + $0xe8] sm:$0xff] %v278_v46 }
  0x55   : > { %510 = vst [vmem:[%s833_s17 + $0xf0] sm:$0xff] %v280_v47 }
  0x56   : > { %512 = vst [vmem:[%s833_s17 + $0x100] sm:$0xf] %v279_v41 }
  0x57   : > { %511 = vst [vmem:[%s833_s17 + $0xf8] sm:$0xff] %v282_v52 }
  0x58   : > { %513 = vst [vmem:[%s833_s17 + $0x108] sm:$0xf] %v281_v44 }
  0x59   : > { %518 = vst [vmem:[%s833_s17 + $0x120] sm:$0xff] %v327_v55 }
  0x5a   : > { %519 = vst [vmem:[%s833_s17 + $0x128] sm:$0xff] %v330_v57 }
  0x5b   : > { %520 = vst [vmem:[%s833_s17 + $0x130] sm:$0xff] %v332_v58 }
  0x5c   : > { %521 = vst [vmem:[%s833_s17 + $0x138] sm:$0xff] %v334_v60 }
  0x5d   : > { %522 = vst [vmem:[%s833_s17 + $0x140] sm:$0xff] %v336_v61 }
  0x5e   : > { %524 = vst [vmem:[%s833_s17 + $0x150] sm:$0x1f] %v335_v56 }
  0x5f   : > { %523 = vst [vmem:[%s833_s17 + $0x148] sm:$0xff] %v338_v62 }
  0x60   : > { %525 = vst [vmem:[%s833_s17 + $0x158] sm:$0x1f] %v337_v59 }
  0x61   : > { %532 = vst [vmem:[%s833_s17 + $0x180] sm:$0xff] %v859_v11 }
  0x62   : > { %533 = vst [vmem:[%s833_s17 + $0x188] sm:$0xff] %v863_v13 }
  0x63   : > { %534 = vst [vmem:[%s833_s17 + $0x190] sm:$0xff] %v228_v32 }
  0x64   : > { %535 = vst [vmem:[%s833_s17 + $0x198] sm:$0xff] %v229_v34 }
  0x65   : > { %536 = vst [vmem:[%s833_s17 + $0x1a0] sm:$0xff] %v230_v35 }
  0x66   : > { %537 = vst [vmem:[%s833_s17 + $0x1a8] sm:$0xff] %v231_v38 }
  0x67   : > { %676 = shalt.err (!%p673_p13)
}
  0x68   : > { %s736_s5 = smov 256   ;;  %s737_s12 = smov 16  }
  0x69   : > { %554 = dma.vmem_to_hbm [thread:$0]  (%p799_p9), %s397_s25, 7680, %s399_s9, %s382_s26, %s736_s5, %s736_s5, %s737_s12  }
  0x6a PF: > { %s413_s13 = sand.u32 1, %s711_s6   ;;  %p561_p0 = pnand %p489_p12, %p806_p11 }
  0x6b   : > { %s414_s15 = scalar_lea.sflag [#allocation4], %s413_s13 }
  0x6c   : > { %p562_p1 = pneg %p561_p0 }
  0x6e   : > { %706 = dma.done.wait (%p562_p1), %s414_s15, 7680  }
  0x6f   : > { %708 = vsyncadd (%p562_p1), %s414_s15, 4294959616  ;;  %s17_s11 = sadd.s32 1, %s731_s11   ;;  %s996_s6 = smov %s715_s7 }
  0x70   : > { %p14_p2 = scmp.ge.s32.totalorder %s17_s11, 4   ;;  %s997_s7 = smov %s719_s8 }
  0x71   : > { %s998_s8 = smov %s804_s20  ;;  %s999_s9 = smov %s727_s10 }
  0x72   : > { %s1000_s10 = smov %s1002_s14  ;;  %16 = sbr.rel (!%p14_p2) target bundleno = 6 (0x6), region = 73 }
  0x77   :  { %420 = vsyncpa [#allocation3], 1 }
  0x78   :  { %422 = vsyncpa [#allocation3 + $0x1], 1 }
  0x79   :  { %423 = vsyncpa [#allocation4], 1 }
  0x7a   :  { %425 = vsyncpa [#allocation4 + $0x1], 1 }

</bundles_post_ra>
